<compile_context>
chip_gen: v5e
topology: v5e:2x2
jax: 0.10.0
libtpu: 0.0.40
codegen_flags: <defaults>
</compile_context>

<pallas_src>
import functools

import jax
import jax.numpy as jnp
from jax.experimental import pallas as pl
from jax.experimental.pallas import tpu as pltpu

HIDDEN = 256
NEG_BIG = -1e30   # finite "minus infinity" for padded action columns


def _round_up(x, m):
    return ((x + m - 1) // m) * m


def policy_kernel(x_ref, w1_ref, b1_ref, w2_ref, b2_ref, g_ref, out_ref, *,
                  n_actions):
    # ---- MLP: Linear(obs,256) -> ReLU -> Linear(256, n_pad) on the MXU.
    #      bf16 matmul inputs, f32 accumulation; elementwise math in f32. ----
    x = x_ref[...].astype(jnp.bfloat16)
    h = jnp.dot(x, w1_ref[...], preferred_element_type=jnp.float32) + b1_ref[...]
    h = jnp.maximum(h, 0.0)
    logits = jnp.dot(h.astype(jnp.bfloat16), w2_ref[...],
                     preferred_element_type=jnp.float32) + b2_ref[...]

    # ---- gumbel-softmax tail, algebraically simplified ----
    z = logits + g_ref[...]                       # padded cols stay ~ -1e30
    z_max = jnp.max(z, axis=1, keepdims=True)
    denom = jnp.sum(jnp.exp(z - z_max), axis=1, keepdims=True)

    # argmax(softmax(z)) == argmax(z); first index among ties (torch.max rule).
    col = jax.lax.broadcasted_iota(jnp.int32, z.shape, 1)
    n_pad = z.shape[1]
    idx = jnp.min(jnp.where(z == z_max, col, jnp.int32(n_pad)),
                  axis=1, keepdims=True)
    y_hard = (col == idx).astype(jnp.float32)

    # selected prob = exp(z_max - z_max) / denom = 1/denom  ->  logpi = -log(denom)
    logpi = -jnp.log(denom)

    # TODO(synk): forward value of one_hot_action_vec == y_hard; the
    # straight-through gradient path (y_hard - soft.detach() + soft) is a
    # backward-only construct and is not represented here.
    # Pack logpi into spare column `n_actions` of the lane-dense output slab.
    out_ref[...] = jnp.where(col == n_actions, logpi, y_hard)


def policy_net_forward(x, w1, b1, w2, b2, gumbel_noise):
    """x:[B,obs], w1:[obs,256], b1:[256], w2:[256,A], b2:[A], gumbel:[B,A]."""
    B, obs_dim = x.shape
    n_actions = w2.shape[1]

    # Lane-dense action width (+1 spare column to carry logpi).
    n_pad = 128 * pl.cdiv(n_actions + 1, 128)
    # Batch tile: multiple of 8 sublanes, capped so VMEM use stays tiny even
    # on v7x's 64 MiB (h tile is tb*1 KiB f32 at HIDDEN=256).
    tb = min(256, _round_up(B, 8))
    b_pad = _round_up(B, tb)

    x_p = jnp.zeros((b_pad, obs_dim), jnp.float32).at[:B].set(x)
    g_p = jnp.zeros((b_pad, n_pad), jnp.float32).at[:B, :n_actions].set(gumbel_noise)
    w2_p = jnp.zeros((HIDDEN, n_pad), jnp.float32).at[:, :n_actions].set(w2)
    b2_p = jnp.full((1, n_pad), NEG_BIG, jnp.float32).at[0, :n_actions].set(b2)
    b1_2d = b1.reshape(1, HIDDEN).astype(jnp.float32)

    # bf16 weights: MXU-native on v6e/v7x, halves weight HBM->VMEM traffic.
    w1_bf = w1.astype(jnp.bfloat16)
    w2_bf = w2_p.astype(jnp.bfloat16)

    out = pl.pallas_call(
        functools.partial(policy_kernel, n_actions=n_actions),
        out_shape=jax.ShapeDtypeStruct((b_pad, n_pad), jnp.float32),
        grid_spec=pltpu.PrefetchScalarGridSpec(
            num_scalar_prefetch=0,
            grid=(b_pad // tb,),
            in_specs=[
                pl.BlockSpec((tb, obs_dim), lambda i: (i, 0)),      # x (tiled)
                pl.BlockSpec((obs_dim, HIDDEN), lambda i: (0, 0)),  # w1 (resident)
                pl.BlockSpec((1, HIDDEN), lambda i: (0, 0)),        # b1 (resident)
                pl.BlockSpec((HIDDEN, n_pad), lambda i: (0, 0)),    # w2 (resident)
                pl.BlockSpec((1, n_pad), lambda i: (0, 0)),         # b2 (resident)
                pl.BlockSpec((tb, n_pad), lambda i: (i, 0)),        # gumbel (tiled)
            ],
            out_specs=pl.BlockSpec((tb, n_pad), lambda i: (i, 0)),
        ),
        compiler_params=pltpu.CompilerParams(
            # batch tiles are independent -> shard across v7x's 2 TensorCores;
            # neutral on single-TC v5e/v6e.
            dimension_semantics=("parallel",),
        ),
    )(x_p, w1_bf, b1_2d, w2_bf, b2_p, g_p)

    one_hot = out[:B, :n_actions]
    logpi = out[:B, n_actions]          # PyTorch returns shape [B]
    return logpi, one_hot


def init_params(key, obs_dim, n_actions):
    """Deterministic init mimicking nn.Linear defaults (U(-1/sqrt(fan_in), +))."""
    k1, k2, k3, k4 = jax.random.split(key, 4)
    bound1 = 1.0 / jnp.sqrt(obs_dim)
    bound2 = 1.0 / jnp.sqrt(HIDDEN)
    w1 = jax.random.uniform(k1, (obs_dim, HIDDEN), jnp.float32, -bound1, bound1)
    b1 = jax.random.uniform(k2, (HIDDEN,), jnp.float32, -bound1, bound1)
    w2 = jax.random.uniform(k3, (HIDDEN, n_actions), jnp.float32, -bound2, bound2)
    b2 = jax.random.uniform(k4, (n_actions,), jnp.float32, -bound2, bound2)
    return w1, b1, w2, b2


if __name__ == "__main__":
    key = jax.random.PRNGKey(0)
    k_x, k_params, k_gumbel = jax.random.split(key, 3)

    B, obs_dim, n_actions = 2, 8, 4
    x = jax.random.normal(k_x, (B, obs_dim), jnp.float32)
    w1, b1, w2, b2 = init_params(k_params, obs_dim, n_actions)
    # Gumbel(0,1) noise == -log(-log(U)), sampled deterministically in JAX.
    gumbel_noise = jax.random.gumbel(k_gumbel, (B, n_actions), jnp.float32)

    logpi, one_hot = policy_net_forward(x, w1, b1, w2, b2, gumbel_noise)
    jax.block_until_ready((logpi, one_hot))

    assert logpi.shape == (B,)
    assert one_hot.shape == (B, n_actions)
    # each row of one_hot must be a valid one-hot vector
    assert bool(jnp.all(jnp.sum(one_hot, axis=1) == 1.0))
    assert bool(jnp.all(jnp.max(one_hot, axis=1) == 1.0))
    # logpi must be <= 0 (log of a probability)
    assert bool(jnp.all(logpi <= 0.0))

    print("KERNEL_OK")
</pallas_src>

<mosaic_0001>
module attributes {stable_mosaic.version = 11 : i64} {
  func.func @policy_kernel(%arg0: i32, %arg1: memref<8x8xf32, #tpu.memory_space<vmem>>, %arg2: memref<8x256xbf16, #tpu.memory_space<vmem>>, %arg3: memref<1x256xf32, #tpu.memory_space<vmem>>, %arg4: memref<256x128xbf16, #tpu.memory_space<vmem>>, %arg5: memref<1x128xf32, #tpu.memory_space<vmem>>, %arg6: memref<8x128xf32, #tpu.memory_space<vmem>>, %arg7: memref<8x128xf32, #tpu.memory_space<vmem>>) attributes {dimension_semantics = [#tpu.dimension_semantics<parallel>], iteration_bounds = array<i64: 1>, scalar_prefetch = 0 : i64, scratch_operands = 0 : i64, tpu.core_type = #tpu.core_type<tc>, window_params = [{transform_indices = @transform_0, window_bounds = array<i64: 8, 8>}, {pipeline_mode = #tpu.pipeline_mode<synchronous>, transform_indices = @transform_1, window_bounds = array<i64: 8, 256>}, {pipeline_mode = #tpu.pipeline_mode<synchronous>, transform_indices = @transform_2, window_bounds = array<i64: 1, 256>}, {pipeline_mode = #tpu.pipeline_mode<synchronous>, transform_indices = @transform_3, window_bounds = array<i64: 256, 128>}, {pipeline_mode = #tpu.pipeline_mode<synchronous>, transform_indices = @transform_4, window_bounds = array<i64: 1, 128>}, {transform_indices = @transform_5, window_bounds = array<i64: 8, 128>}, {transform_indices = @transform_6, window_bounds = array<i64: 8, 128>}]} {
    %c0 = arith.constant 0 : index
    %c0_0 = arith.constant 0 : index
    %0 = vector.load %arg1[%c0, %c0_0] : memref<8x8xf32, #tpu.memory_space<vmem>>, vector<8x8xf32>
    %1 = arith.truncf %0 : vector<8x8xf32> to vector<8x8xbf16>
    %c0_1 = arith.constant 0 : index
    %c0_2 = arith.constant 0 : index
    %2 = vector.load %arg2[%c0_1, %c0_2] : memref<8x256xbf16, #tpu.memory_space<vmem>>, vector<8x256xbf16>
    %cst = arith.constant dense<0.000000e+00> : vector<8x256xf32>
    %3 = tpu.matmul %1, %2, %cst {dimension_numbers = #tpu.dot_dimension_numbers<[1], [0], [0], [1], [0, 0, 1, 1], [], []>} : vector<8x8xbf16>, vector<8x256xbf16>, vector<8x256xf32> -> vector<8x256xf32>
    %c0_3 = arith.constant 0 : index
    %c0_4 = arith.constant 0 : index
    %4 = vector.load %arg3[%c0_3, %c0_4] : memref<1x256xf32, #tpu.memory_space<vmem>>, vector<1x256xf32>
    %5 = vector.broadcast %4 : vector<1x256xf32> to vector<8x256xf32>
    %6 = arith.addf %3, %5 : vector<8x256xf32>
    %cst_5 = arith.constant 0.000000e+00 : f32
    %7 = vector.broadcast %cst_5 : f32 to vector<8x256xf32>
    %8 = arith.maximumf %6, %7 : vector<8x256xf32>
    %9 = arith.truncf %8 : vector<8x256xf32> to vector<8x256xbf16>
    %c0_6 = arith.constant 0 : index
    %c0_7 = arith.constant 0 : index
    %10 = vector.load %arg4[%c0_6, %c0_7] : memref<256x128xbf16, #tpu.memory_space<vmem>>, vector<256x128xbf16>
    %cst_8 = arith.constant dense<0.000000e+00> : vector<8x128xf32>
    %11 = tpu.matmul %9, %10, %cst_8 {dimension_numbers = #tpu.dot_dimension_numbers<[1], [0], [0], [1], [0, 0, 1, 1], [], []>} : vector<8x256xbf16>, vector<256x128xbf16>, vector<8x128xf32> -> vector<8x128xf32>
    %c0_9 = arith.constant 0 : index
    %c0_10 = arith.constant 0 : index
    %12 = vector.load %arg5[%c0_9, %c0_10] : memref<1x128xf32, #tpu.memory_space<vmem>>, vector<1x128xf32>
    %13 = vector.broadcast %12 : vector<1x128xf32> to vector<8x128xf32>
    %14 = arith.addf %11, %13 : vector<8x128xf32>
    %c0_11 = arith.constant 0 : index
    %c0_12 = arith.constant 0 : index
    %15 = vector.load %arg6[%c0_11, %c0_12] : memref<8x128xf32, #tpu.memory_space<vmem>>, vector<8x128xf32>
    %16 = arith.addf %14, %15 : vector<8x128xf32>
    %cst_13 = arith.constant dense<0xFF800000> : vector<8xf32>
    %17 = vector.multi_reduction <maximumf>, %16, %cst_13 [1] : vector<8x128xf32> to vector<8xf32>
    %18 = vector.shape_cast %17 : vector<8xf32> to vector<8x1xf32>
    %19 = vector.broadcast %18 : vector<8x1xf32> to vector<8x128xf32>
    %20 = arith.subf %16, %19 : vector<8x128xf32>
    %21 = math.exp %20 : vector<8x128xf32>
    %cst_14 = arith.constant dense<0.000000e+00> : vector<8xf32>
    %22 = vector.multi_reduction <add>, %21, %cst_14 [1] : vector<8x128xf32> to vector<8xf32>
    %23 = vector.shape_cast %22 : vector<8xf32> to vector<8x1xf32>
    %24 = tpu.iota {dimensions = array<i32: 1>} : vector<8x128xi32>
    %25 = vector.broadcast %18 : vector<8x1xf32> to vector<8x128xf32>
    %26 = arith.cmpf oeq, %16, %25 : vector<8x128xf32>
    %c128_i32 = arith.constant 128 : i32
    %27 = vector.broadcast %c128_i32 : i32 to vector<8x128xi32>
    %28 = arith.select %26, %24, %27 : vector<8x128xi1>, vector<8x128xi32>
    %cst_15 = arith.constant dense<2147483647> : vector<8xi32>
    %29 = vector.multi_reduction <minsi>, %28, %cst_15 [1] : vector<8x128xi32> to vector<8xi32>
    %30 = vector.shape_cast %29 : vector<8xi32> to vector<8x1xi32>
    %31 = vector.broadcast %30 : vector<8x1xi32> to vector<8x128xi32>
    %32 = arith.cmpi eq, %24, %31 : vector<8x128xi32>
    %33 = arith.extui %32 : vector<8x128xi1> to vector<8x128xi32>
    %34 = arith.sitofp %33 : vector<8x128xi32> to vector<8x128xf32>
    %35 = math.log %23 : vector<8x1xf32>
    %cst_16 = arith.constant 0.000000e+00 : f32
    %36 = vector.broadcast %cst_16 : f32 to vector<8x1xf32>
    %37 = arith.subf %36, %35 : vector<8x1xf32>
    %c4_i32 = arith.constant 4 : i32
    %38 = vector.broadcast %c4_i32 : i32 to vector<8x128xi32>
    %39 = arith.cmpi eq, %24, %38 : vector<8x128xi32>
    %40 = vector.shape_cast %37 : vector<8x1xf32> to vector<8x1xf32>
    %41 = vector.broadcast %40 : vector<8x1xf32> to vector<8x128xf32>
    %42 = arith.select %39, %41, %34 : vector<8x128xi1>, vector<8x128xf32>
    %c0_17 = arith.constant 0 : index
    %c0_18 = arith.constant 0 : index
    %43 = vector.load %arg7[%c0_17, %c0_18] : memref<8x128xf32, #tpu.memory_space<vmem>>, vector<8x128xf32>
    tpu.vector_store %arg7[%c0_17, %c0_18], %42 {strides = array<i32>} : memref<8x128xf32, #tpu.memory_space<vmem>>, vector<8x128xf32>,
    return
  }
  func.func @transform_0(%arg0: i32) -> (i32, i32) {
    %c0_i32 = arith.constant 0 : i32
    %c0_i32_0 = arith.constant 0 : i32
    return %arg0, %c0_i32 : i32, i32
  }
  func.func @transform_1(%arg0: i32) -> (i32, i32) {
    %c0_i32 = arith.constant 0 : i32
    %c0_i32_0 = arith.constant 0 : i32
    %c0_i32_1 = arith.constant 0 : i32
    return %c0_i32, %c0_i32_0 : i32, i32
  }
  func.func @transform_2(%arg0: i32) -> (i32, i32) {
    %c0_i32 = arith.constant 0 : i32
    %c0_i32_0 = arith.constant 0 : i32
    %c0_i32_1 = arith.constant 0 : i32
    return %c0_i32, %c0_i32_0 : i32, i32
  }
  func.func @transform_3(%arg0: i32) -> (i32, i32) {
    %c0_i32 = arith.constant 0 : i32
    %c0_i32_0 = arith.constant 0 : i32
    %c0_i32_1 = arith.constant 0 : i32
    return %c0_i32, %c0_i32_0 : i32, i32
  }
  func.func @transform_4(%arg0: i32) -> (i32, i32) {
    %c0_i32 = arith.constant 0 : i32
    %c0_i32_0 = arith.constant 0 : i32
    %c0_i32_1 = arith.constant 0 : i32
    return %c0_i32, %c0_i32_0 : i32, i32
  }
  func.func @transform_5(%arg0: i32) -> (i32, i32) {
    %c0_i32 = arith.constant 0 : i32
    %c0_i32_0 = arith.constant 0 : i32
    return %arg0, %c0_i32 : i32, i32
  }
  func.func @transform_6(%arg0: i32) -> (i32, i32) {
    %c0_i32 = arith.constant 0 : i32
    %c0_i32_0 = arith.constant 0 : i32
    return %arg0, %c0_i32 : i32, i32
  }
}

</mosaic_0001>

<bundles_post_ra>
// kernel: tpu_custom_call.1
= control target key start
LH: loop header
LB: loop body
LE: loop exit
PB: predicated region body
PF: predicated region fallthrough
CT: control target
= control target key end

     0   :  { %11 = vsyncpa [#allocation3], 0  ;;  %s677_s0 = inlined_call_operand.hbm [shape: f32[8,8], index: 0, kind: input, shape index: {}]   ;;  %s678_s1 = inlined_call_operand.hbm [shape: bf16[8,256], index: 1, kind: input, shape index: {}]   ;;  %s679_s2 = inlined_call_operand.hbm [shape: f32[1,256], index: 2, kind: input, shape index: {}]   ;;  %s680_s3 = inlined_call_operand.hbm [shape: bf16[256,128], index: 3, kind: input, shape index: {}]   ;;  %s681_s4 = inlined_call_operand.vmem [shape: f32[1,128], index: 4, kind: input, shape index: {}]   ;;  %s682_s5 = inlined_call_operand.hbm [shape: f32[8,128], index: 5, kind: input, shape index: {}]   ;;  %s683_s6 = inlined_call_operand.hbm [shape: f32[8,128], index: 6, kind: output, shape index: {}]  }
   0x1   :  { %12 = vsyncpa [#allocation6], 0 }
   0x2   :  { %13 = vsyncpa [#allocation9], 0  ;;  %s31_s23 = sshll.u32 %s678_s1, 4  ;;  %s32_s23 = int_to_ptr.hbm [resolvable:$true] %s31_s23 }
   0x3   :  { %14 = vsyncpa [#allocation4], 0  ;;  %s612_s24 = smov [#allocation5]   ;;  %s52_s28 = sshll.u32 %s680_s3, 4  ;;  %s53_s28 = int_to_ptr.hbm [resolvable:$true] %s52_s28 }
   0x4   :  { %s33_s25 = sshll.u32 %s612_s24, 4  ;;  %s613_s29 = smov [#allocation8]   ;;  %s34_s25 = int_to_ptr.vmem [resolvable:$true] %s33_s25 }
   0x5   :  { %36 = dma.hbm_to_vmem [thread:$0]  %s32_s23, 128, %s34_s25, [#allocation6]  }
   0x6   :  { %s54_s30 = sshll.u32 %s613_s29, 4  ;;  %s614_s7 = smov 64   ;;  %s55_s30 = int_to_ptr.vmem [resolvable:$true] %s54_s30 }
   0x7   :  { %s615_s8 = smov 4   ;;  %s20_s1 = sshll.u32 %s677_s0, 4  ;;  %s21_s1 = int_to_ptr.hbm [resolvable:$true] %s20_s1 }
   0x8   :  { %60 = dma.hbm_to_vmem [thread:$0]  %s53_s28, 2048, %s55_s30, [#allocation9], %s614_s7, %s614_s7, %s615_s8  }
   0x9   :  { %s616_s11 = smov [#allocation2]   ;;  %s42_s3 = sshll.u32 %s679_s2, 4  ;;  %s43_s3 = int_to_ptr.hbm [resolvable:$true] %s42_s3 }
   0xa   :  { %s22_s12 = sshll.u32 %s616_s11, 4  ;;  %s617_s15 = smov [#allocation7]   ;;  %s23_s12 = int_to_ptr.vmem [resolvable:$true] %s22_s12 }
   0xb   :  { %25 = dma.hbm_to_vmem [thread:$0]  %s21_s1, 128, %s23_s12, [#allocation3]  }
   0xc   :  { %s44_s16 = sshll.u32 %s617_s15, 4  ;;  %s68_s19 = sshll.u32 %s682_s5, 4  ;;  %s45_s16 = int_to_ptr.vmem [resolvable:$true] %s44_s16  ;;  %s69_s19 = int_to_ptr.hbm [resolvable:$true] %s68_s19 }
   0xd   :  { %47 = dma.hbm_to_vmem [thread:$0]  %s43_s3, 32, %s45_s16, [#allocation6]  }
   0xe   :  { %s618_s0 = smov [#allocation10]  }
   0xf   :  { %s70_s20 = sshll.u32 %s618_s0, 4  ;;  %s71_s20 = int_to_ptr.vmem [resolvable:$true] %s70_s20 }
  0x10   :  { %73 = dma.hbm_to_vmem [thread:$0]  %s69_s19, 128, %s71_s20, [#allocation9]  }
  0x11   :  { %604 = dma.done.wait [#allocation3], 128  }
  0x12   :  { %605 = vsyncadd [#allocation3], 4294967168 }
  0x13   :  { %606 = dma.done.wait [#allocation6], 160  }
  0x14   :  { %607 = vsyncadd [#allocation6], 4294967136 }
  0x15   :  { %608 = dma.done.wait [#allocation9], 2176  }
  0x16   :  { %609 = vsyncadd [#allocation9], 4294965120  ;;  %v97_v0 = vld [vmem:[#allocation5] sm:$0xff]  ;;  %vm113_vm0 = vcmask 1043456   ;;  %v95_v5 = vld [vmem:[#allocation2] sm:$0xff]  ;;  %vm109_vm1 = vcmask 64512   ;;  %v317_v47 = vlaneseq }
  0x17   :  { %v437_v1 = vld [vmem:[#allocation8 + $0x38] sm:$0xff]  ;;  %v105_v2 = vunpack.c.l.b16 %v97_v0  ;;  %v106_v3 = vunpack.c.h.b16 %v97_v0  ;;  %v436_v8 = vld [vmem:[#allocation8 + $0x30] sm:$0xff]  ;;  %v96_v12 = vpack.c.bf16 %v95_v5, %v95_v5  ;;  %v435_v13 = vld [vmem:[#allocation8 + $0x28] sm:$0xff]  ;;  %s351_s24 = sshll.u32 %s683_s6, 4  ;;  %v620_v5 = vmov 0.0   ;;  %s352_s24 = int_to_ptr.hbm [resolvable:$true] %s351_s24 }
  0x18   :  { %v445_v4 = vld [vmem:[#allocation8 + $0x78] sm:$0xff]  ;;  %282 = vmatpush.bf16.msra.mxu2 %v437_v1  ;;  %v444_v9 = vld [vmem:[#allocation8 + $0x70] sm:$0xff]  ;;  %v443_v14 = vld [vmem:[#allocation8 + $0x68] sm:$0xff]  ;;  %v318_v48 = vand.u32 127, %v317_v47 }
  0x19   :  { %v107_v6 = vpack.c.b16 %v105_v2, %v105_v2  ;;  %v108_v7 = vpack.c.b16 %v106_v3, %v106_v3  ;;  %295 = vmatpush.bf16.msra.mxu3 %v445_v4  ;;  %v434_v15 = vld [vmem:[#allocation8 + $0x20] sm:$0xff]  ;;  %v433_v17 = vld [vmem:[#allocation8 + $0x18] sm:$0xff]  ;;  %v432_v19 = vld [vmem:[#allocation8 + $0x10] sm:$0xff] }
  0x1a   :  { %v442_v16 = vld [vmem:[#allocation8 + $0x60] sm:$0xff]  ;;  %v441_v18 = vld [vmem:[#allocation8 + $0x58] sm:$0xff]  ;;  %v440_v20 = vld [vmem:[#allocation8 + $0x50] sm:$0xff]  ;;  %vm341_vm4 = vcmp.eq.s32.totalorder %v318_v48, 4 }
  0x1b   :  { %v115_v10 = vsel %vm113_vm0, %v107_v6, 0  ;;  %v118_v11 = vsel %vm113_vm0, %v108_v7, 0  ;;  %v431_v21 = vld [vmem:[#allocation8 + $0x8] sm:$0xff]  ;;  %v430_v23 = vld [vmem:[#allocation8] sm:$0xff]  ;;  %v98_v25 = vld [vmem:[#allocation7] sm:$0x3] }
  0x1c   :  { %127 = vmatpush.bf16.msra.mxu0 %v115_v10  ;;  %140 = vmatpush.bf16.msra.mxu1 %v118_v11  ;;  %v439_v22 = vld [vmem:[#allocation8 + $0x48] sm:$0xff]  ;;  %v438_v24 = vld [vmem:[#allocation8 + $0x40] sm:$0xff]  ;;  %v100_v26 = vperm.slane %v98_v25, 0  ;;  %v101_v27 = vperm.slane %v98_v25, 1 }
  0x1d   :  { %283 = vmatpush.bf16.msra.mxu2 %v436_v8  ;;  %296 = vmatpush.bf16.msra.mxu3 %v444_v9  ;;  %v455_v38 = vld [vmem:[%s681_s4] ss:$0 sm:$0xff]  ;;  %v308_v42 = vld [vmem:[#allocation10] sm:$0xff]  ;;  %s619_s4 = smov [#allocation11]  }
  0x1e   :  { %s349_s21 = sshll.u32 %s619_s4, 4  ;;  %s350_s21 = int_to_ptr.vmem [resolvable:$true] %s349_s21 }
  0x1f   :  { %363 = vmatmul.msk.bf16.vlgmr.msra.gmra.mxu0 %vm109_vm1, %v96_v12  ;;  %364 = vmatmul.msk.bf16.vlgmr.msra.gmra.mxu1 %vm109_vm1, %v96_v12 }
  0x21   :  { %284 = vmatpush.bf16.msra.mxu2 %v435_v13  ;;  %297 = vmatpush.bf16.msra.mxu3 %v443_v14 }
  0x25   :  { %285 = vmatpush.bf16.msra.mxu2 %v434_v15  ;;  %298 = vmatpush.bf16.msra.mxu3 %v442_v16 }
  0x29   :  { %286 = vmatpush.bf16.msra.mxu2 %v433_v17  ;;  %299 = vmatpush.bf16.msra.mxu3 %v441_v18 }
  0x2d   :  { %287 = vmatpush.bf16.msra.mxu2 %v432_v19  ;;  %300 = vmatpush.bf16.msra.mxu3 %v440_v20 }
  0x31   :  { %288 = vmatpush.bf16.msra.mxu2 %v431_v21  ;;  %301 = vmatpush.bf16.msra.mxu3 %v439_v22 }
  0x35   :  { %289 = vmatpush.bf16.msra.mxu2 %v430_v23  ;;  %302 = vmatpush.bf16.msra.mxu3 %v438_v24 }
  0x9c   :  { %v129_v28 = vpop.f32.mrf.mxu0  ;;  %v142_v29 = vpop.f32.mrf.mxu1 }
  0x9d   :  { %v130_v30 = vadd.f32 %v129_v28, %v100_v26  ;;  %v143_v31 = vadd.f32 %v142_v29, %v101_v27 }
  0x9f   :  { %v146_v32 = vmax.f32 %v130_v30, 0.0  ;;  %v147_v33 = vmax.f32 %v143_v31, 0.0 }
  0xa1   :  { %v148_v34 = vpack.c.bf16 %v146_v32, %v146_v32  ;;  %v149_v35 = vpack.c.bf16 %v147_v33, %v147_v33 }
  0xa3   :  { %290 = vmatmul.bf16.vlgmr.msra.gmra.mxu2 %v148_v34  ;;  %303 = vmatmul.bf16.vlgmr.msra.gmra.mxu3 %v149_v35 }
  0xa4   :  { %v131_v36 = vpop.f32.mrf.mxu0  ;;  %v144_v37 = vpop.f32.mrf.mxu1 }
 0x126   :  { %v291_v39 = vpop.f32.mrf.mxu2  ;;  %v304_v40 = vpop.f32.mrf.mxu3 }
 0x127   :  { %v292_v41 = vadd.f32 %v455_v38, %v291_v39 }
 0x129   :  { %v305_v43 = vadd.f32 %v304_v40, %v292_v41 }
 0x12b   :  { %v309_v44 = vadd.f32 %v308_v42, %v305_v43 }
 0x12d   :  { %310 = vmax.xlane.f32.xlu0 %v309_v44 }
 0x12e   :  { %v293_v45 = vpop.f32.mrf.mxu2  ;;  %v306_v46 = vpop.f32.mrf.mxu3 }
 0x1a0   :  { %v311_v49 = vpop.xlane.xlu0 %310 }
 0x1a1   :  { %v312_v50 = vsub.f32 %v309_v44, %v311_v49  ;;  %vm319_vm2 = vcmp.eq.f32.partialorder %v309_v44, %v311_v49 }
 0x1a2   :  { %v320_v51 = vsel %vm319_vm2, %v318_v48, 128 }
 0x1a3   :  { %v322_v52 = vshra.s32 %v320_v51, 16  ;;  %v313_v53 = vmul.f32 1.442695, %v312_v50  ;;  %v321_v56 = vand.u32 65535, %v320_v51 }
 0x1a5   :  { %v324_v54 = vcvt.s32.f32 %v322_v52  ;;  %456 = vpow2.f32 %v313_v53  ;;  %v323_v58 = vcvt.s32.f32 %v321_v56 }
 0x1a7   :  { %325 = vmin.xlane.f32.xlu0 %v324_v54 }
 0x1ab   :  { %v457_v55 = vpop.eup %456 }
 0x1ac   :  { %315 = vadd.xlane.f32.xlu1 %v457_v55 }
 0x21a   :  { %v326_v57 = vpop.xlane.xlu0 %325 }
 0x21b   :  { %vm327_vm3 = vcmp.eq.f32.partialorder %v324_v54, %v326_v57  ;;  %v332_v61 = vcvt.f32.s32 %v326_v57 }
 0x21c   :  { %v328_v59 = vsel %vm327_vm3, %v323_v58, inf }
 0x21d   :  { %329 = vmin.xlane.f32.xlu1 %v328_v59  ;;  %v333_v0 = vshll.u32 %v332_v61, 16 }
 0x21f   :  { %v316_v60 = vpop.xlane.xlu1 %315 }
 0x220   :  { %458 = vlog2.f32 %v316_v60 }
 0x226   :  { %v459_v62 = vpop.eup %458 }
 0x227   :  { %v339_v1 = vmul.f32 0.6931472, %v459_v62 }
 0x229   :  { %v340_v4 = vsub.f32 0.0, %v339_v1 }
 0x290   :  { %v330_v63 = vpop.xlane.xlu1 %329 }
 0x291   :  { %v331_v2 = vcvt.f32.s32 %v330_v63 }
 0x293   :  { %v334_v3 = vadd.s32 %v333_v0, %v331_v2 }
 0x295   :  { %vm335_vm5 = vcmp.eq.s32.totalorder %v318_v48, %v334_v3 }
 0x296   :  { %v429_v6 = vsel %vm335_vm5, 1.0, %v620_v5 }
 0x297   :  { %v342_v7 = vsel %vm341_vm4, %v340_v4, %v429_v6 }
 0x298   :  { %343 = vst [vmem:[#allocation11] sm:$0xff] %v342_v7 }
 0x299   :  { %354 = dma.vmem_to_hbm [thread:$0]  %s350_s21, 128, %s352_s24, [#allocation4]  }
 0x29a   :  { %610 = dma.done.wait [#allocation4], 128  }
 0x29b   :  { %611 = vsyncadd [#allocation4], 4294967168 }
 0x29c   :  { %359 = vsyncpa [#allocation3], 1 }
 0x29d   :  { %360 = vsyncpa [#allocation6], 1 }
 0x29e   :  { %361 = vsyncpa [#allocation9], 1 }
 0x29f   :  { %362 = vsyncpa [#allocation4], 1 }

</bundles_post_ra>
